<compile_context>
chip_gen: v5e
topology: v5e:2x2
jax: 0.10.0
libtpu: 0.0.40
codegen_flags: <defaults>
</compile_context>

<pallas_src>
import jax
import jax.numpy as jnp
from jax.experimental import pallas as pl
from jax.experimental.pallas import tpu as pltpu


def _round_up(x: int, m: int) -> int:
    return ((x + m - 1) // m) * m


def _make_decoder_kernel(num_layers: int, h_pad: int):
    """Kernel closed over the (static) layer count and lane-padded hidden size."""
    HP = h_pad

    def kernel(x_ref, *refs):
        # refs layout: [w_0, b_0, ..., w_{L-1}, b_{L-1}, w_lin, b_lin, out_ref]
        out_ref = refs[-1]
        w_lin_ref = refs[-3]
        b_lin_ref = refs[-2]

        # Features arrive as bf16 (cast in the wrapper); MXU accumulates in f32.
        h = x_ref[...]                                   # (TB, E_in) bf16
        for layer in range(num_layers):
            w_ref = refs[2 * layer + 0]                  # (E_in, 3*HP) bf16, cols i|g|o
            b_ref = refs[2 * layer + 1]                  # (1, 3*HP) f32, fused b_ih+b_hh

            # Single lane-dense gate matmul + one fused bias add.
            z = jnp.dot(h, w_ref[...], preferred_element_type=jnp.float32) + b_ref[...]

            # Lane-aligned gate views (each block is HP = multiple of 128 lanes).
            i_g = jax.nn.sigmoid(z[:, 0 * HP:1 * HP])
            g_g = jnp.tanh(z[:, 1 * HP:2 * HP])
            o_g = jax.nn.sigmoid(z[:, 2 * HP:3 * HP])
            # seq_len == 1, state=None => c_prev == 0: forget-gate path is exactly
            # zero and its columns were never packed.
            c = i_g * g_g
            h = (o_g * jnp.tanh(c)).astype(jnp.bfloat16)  # next-layer input
            # NOTE: lane-padded hidden entries stay exactly 0:
            #   z_pad = 0 -> i=0.5, g=0 -> c=0 -> h_pad = 0.5 * tanh(0) = 0.

        logits = (
            jnp.dot(h, w_lin_ref[...], preferred_element_type=jnp.float32)
            + b_lin_ref[...]
        )
        out_ref[...] = logits.astype(out_ref.dtype)

    return kernel


def decoder_rnn_forward(features, packed_lstm, packed_linear, num_classes):
    """features: (B, E) float32/bfloat16. Returns logits (B, num_classes) float32."""
    assert features.ndim == 2, "DecoderRNN kernel expects (B, embed_size) features"
    B, E = features.shape
    num_layers = len(packed_lstm)
    w_lin, b_lin = packed_linear                    # (H_pad, C_pad) bf16, (1, C_pad) f32
    C_pad = w_lin.shape[-1]
    H_pad = packed_lstm[0][0].shape[-1] // 3

    # ---- Batch tile selection --------------------------------------------
    # Tiny batches: one grid step with the whole padded batch (pure-overhead
    # regime otherwise). Large batches: 256-row tiles (one full bf16 MXU pass
    # on v6e/v7x) with a parallel batch grid axis.
    SUBLANE = 8
    SINGLE_STEP_MAX = 512
    LARGE_TB = 256
    b8 = _round_up(B, SUBLANE)
    TB = b8 if b8 <= SINGLE_STEP_MAX else LARGE_TB
    B_pad = _round_up(B, TB)

    # bf16 features in the wrapper: halves streaming input DMA.
    feats = features.astype(jnp.bfloat16)
    if B_pad != B:
        feats = jnp.pad(feats, ((0, B_pad - B), (0, 0)))

    flat_params = []
    for (w, b) in packed_lstm:
        flat_params.extend([w, b])
    flat_params.extend([w_lin, b_lin])

    # Features / output are blocked over the batch grid axis; weights use a
    # constant index_map so they stay resident in VMEM across grid steps.
    in_specs = [pl.BlockSpec((TB, E), lambda i: (i, 0))]
    in_specs += [pl.BlockSpec(a.shape, lambda i: (0, 0)) for a in flat_params]
    out_spec = pl.BlockSpec((TB, C_pad), lambda i: (i, 0))

    # ---- Explicit VMEM budget --------------------------------------------
    param_bytes = sum(a.size * a.dtype.itemsize for a in flat_params)
    io_tile_bytes = 2 * TB * E * 2 + 2 * TB * C_pad * 4        # double-buffered in/out
    gate_bytes = 2 * TB * 3 * H_pad * 4                        # z + gate temporaries
    vmem_limit = 2 * param_bytes + io_tile_bytes + gate_bytes + (4 << 20)
    vmem_limit = int(min(max(vmem_limit, 8 << 20), 64 << 20))  # valid on v5e/v6e/v7x

    flops = 2 * B_pad * (
        E * 3 * H_pad
        + (num_layers - 1) * H_pad * 3 * H_pad
        + H_pad * C_pad
    )
    transcendentals = B_pad * num_layers * 4 * H_pad
    bytes_accessed = (
        feats.size * feats.dtype.itemsize
        + param_bytes
        + B_pad * C_pad * 4
    )

    kernel = _make_decoder_kernel(num_layers, H_pad)
    out = pl.pallas_call(
        kernel,
        out_shape=jax.ShapeDtypeStruct((B_pad, C_pad), jnp.float32),
        grid=(B_pad // TB,),
        in_specs=in_specs,
        out_specs=out_spec,
        compiler_params=pltpu.CompilerParams(
            dimension_semantics=("parallel",),
            vmem_limit_bytes=vmem_limit,
        ),
        cost_estimate=pl.CostEstimate(
            flops=flops,
            transcendentals=transcendentals,
            bytes_accessed=bytes_accessed,
        ),
    )(feats, *flat_params)

    # Strip batch / class padding outside the kernel (lane-dense store inside).
    return out[:B, :num_classes]


def init_params(key, embed_size, hidden_size, num_classes, num_layers):
    """PyTorch-style uniform(-1/sqrt(H), 1/sqrt(H)) init, repacked for the kernel.

    Packing per LSTM layer:
      * PyTorch weight_ih_l{k} is (4H, in_dim) with gate rows ordered i|f|g|o.
      * The f gate and w_hh are exactly dead for seq_len==1 / zero state, so we
        keep only i|g|o, transpose to (in_dim, ...) and place each gate block at
        a lane-aligned offset of H_pad = ceil(H/128)*128 -> (in_dim_pad, 3*H_pad).
      * Biases b_ih + b_hh are fused into one (1, 3*H_pad) f32 row.
    """
    H = hidden_size
    H_pad = _round_up(H, 128)
    k = 1.0 / float(H) ** 0.5

    packed_lstm = []
    for layer in range(num_layers):
        in_dim = embed_size if layer == 0 else H
        in_dim_pad = embed_size if layer == 0 else H_pad
        key, k1, k2, k3, k4 = jax.random.split(key, 5)
        w_ih = jax.random.uniform(k1, (4 * H, in_dim), jnp.float32, -k, k)
        _w_hh = jax.random.uniform(k2, (4 * H, H), jnp.float32, -k, k)
        b_ih = jax.random.uniform(k3, (4 * H,), jnp.float32, -k, k)
        b_hh = jax.random.uniform(k4, (4 * H,), jnp.float32, -k, k)
        # w_hh never touches data: seq_len == 1 and state=None => h_prev == 0.
        del _w_hh

        b = b_ih + b_hh
        # Gate slices in PyTorch order: i = [0:H], f = [H:2H] (dead), g = [2H:3H], o = [3H:4H].
        gate_w = (w_ih[0:H], w_ih[2 * H:3 * H], w_ih[3 * H:4 * H])
        gate_b = (b[0:H], b[2 * H:3 * H], b[3 * H:4 * H])

        w_packed = jnp.zeros((in_dim_pad, 3 * H_pad), jnp.float32)
        b_packed = jnp.zeros((1, 3 * H_pad), jnp.float32)
        for g_idx, (wg, bg) in enumerate(zip(gate_w, gate_b)):
            col0 = g_idx * H_pad
            w_packed = w_packed.at[:in_dim, col0:col0 + H].set(wg.T)
            b_packed = b_packed.at[:, col0:col0 + H].set(bg)
        packed_lstm.append((w_packed.astype(jnp.bfloat16), b_packed))

    key, k5, k6 = jax.random.split(key, 3)
    w_lin = jax.random.uniform(k5, (num_classes, H), jnp.float32, -k, k)
    b_lin = jax.random.uniform(k6, (num_classes,), jnp.float32, -k, k)

    # Lane-dense class dimension (multiple of 128); rows padded to H_pad
    # (the padded hidden entries are exactly zero, so padded rows are inert).
    C_pad = _round_up(num_classes, 128)
    w_lin_p = jnp.zeros((H_pad, C_pad), jnp.float32).at[:H, :num_classes].set(w_lin.T)
    b_lin_p = jnp.zeros((1, C_pad), jnp.float32).at[:, :num_classes].set(b_lin)
    packed_linear = (w_lin_p.astype(jnp.bfloat16), b_lin_p)
    return packed_lstm, packed_linear


def reference_forward(features, packed_lstm, packed_linear):
    """Pure-JAX reference of the same math / precision (for verification)."""
    h = features.astype(jnp.bfloat16)
    for (w, b) in packed_lstm:
        HP = w.shape[-1] // 3
        z = jnp.dot(h, w, preferred_element_type=jnp.float32) + b
        i_g = jax.nn.sigmoid(z[:, 0 * HP:1 * HP])
        g_g = jnp.tanh(z[:, 1 * HP:2 * HP])
        o_g = jax.nn.sigmoid(z[:, 2 * HP:3 * HP])
        h = (o_g * jnp.tanh(i_g * g_g)).astype(jnp.bfloat16)
    w_lin, b_lin = packed_linear
    return jnp.dot(h, w_lin, preferred_element_type=jnp.float32) + b_lin


if __name__ == "__main__":
    embed_size = 16
    hidden_size = 32
    num_classes = 8
    num_layers = 2
    batch = 4

    key = jax.random.PRNGKey(0)
    key, fkey = jax.random.split(key)
    features = jax.random.normal(fkey, (batch, embed_size), jnp.float32)

    packed_lstm, packed_linear = init_params(
        key, embed_size, hidden_size, num_classes, num_layers
    )

    out = decoder_rnn_forward(features, packed_lstm, packed_linear, num_classes)
    out = jax.block_until_ready(out)

    ref = reference_forward(features, packed_lstm, packed_linear)[:, :num_classes]
    assert out.shape == (batch, num_classes)
    assert jnp.allclose(out, ref, atol=1e-3, rtol=1e-3), "mismatch vs reference"

    print("KERNEL_OK")
</pallas_src>

<mosaic_0001>
module attributes {stable_mosaic.version = 11 : i64} {
  func.func @kernel(%arg0: i32, %arg1: memref<8x16xbf16, #tpu.memory_space<vmem>>, %arg2: memref<16x384xbf16, #tpu.memory_space<vmem>>, %arg3: memref<1x384xf32, #tpu.memory_space<vmem>>, %arg4: memref<128x384xbf16, #tpu.memory_space<vmem>>, %arg5: memref<1x384xf32, #tpu.memory_space<vmem>>, %arg6: memref<128x128xbf16, #tpu.memory_space<vmem>>, %arg7: memref<1x128xf32, #tpu.memory_space<vmem>>, %arg8: memref<8x128xf32, #tpu.memory_space<vmem>>) attributes {dimension_semantics = [#tpu.dimension_semantics<parallel>], iteration_bounds = array<i64: 1>, scalar_prefetch = 0 : i64, scratch_operands = 0 : i64, tpu.core_type = #tpu.core_type<tc>, window_params = [{transform_indices = @transform_0, window_bounds = array<i64: 8, 16>}, {pipeline_mode = #tpu.pipeline_mode<synchronous>, transform_indices = @transform_1, window_bounds = array<i64: 16, 384>}, {pipeline_mode = #tpu.pipeline_mode<synchronous>, transform_indices = @transform_2, window_bounds = array<i64: 1, 384>}, {pipeline_mode = #tpu.pipeline_mode<synchronous>, transform_indices = @transform_3, window_bounds = array<i64: 128, 384>}, {pipeline_mode = #tpu.pipeline_mode<synchronous>, transform_indices = @transform_4, window_bounds = array<i64: 1, 384>}, {pipeline_mode = #tpu.pipeline_mode<synchronous>, transform_indices = @transform_5, window_bounds = array<i64: 128, 128>}, {pipeline_mode = #tpu.pipeline_mode<synchronous>, transform_indices = @transform_6, window_bounds = array<i64: 1, 128>}, {transform_indices = @transform_7, window_bounds = array<i64: 8, 128>}]} {
    %c0 = arith.constant 0 : index
    %c0_0 = arith.constant 0 : index
    %0 = vector.load %arg1[%c0, %c0_0] : memref<8x16xbf16, #tpu.memory_space<vmem>>, vector<8x16xbf16>
    %c0_1 = arith.constant 0 : index
    %c0_2 = arith.constant 0 : index
    %1 = vector.load %arg2[%c0_1, %c0_2] : memref<16x384xbf16, #tpu.memory_space<vmem>>, vector<16x384xbf16>
    %cst = arith.constant dense<0.000000e+00> : vector<8x384xf32>
    %2 = tpu.matmul %0, %1, %cst {dimension_numbers = #tpu.dot_dimension_numbers<[1], [0], [0], [1], [0, 0, 1, 1], [], []>} : vector<8x16xbf16>, vector<16x384xbf16>, vector<8x384xf32> -> vector<8x384xf32>
    %c0_3 = arith.constant 0 : index
    %c0_4 = arith.constant 0 : index
    %3 = vector.load %arg3[%c0_3, %c0_4] : memref<1x384xf32, #tpu.memory_space<vmem>>, vector<1x384xf32>
    %4 = vector.broadcast %3 : vector<1x384xf32> to vector<8x384xf32>
    %5 = arith.addf %2, %4 : vector<8x384xf32>
    %6 = vector.extract_strided_slice %5 {offsets = [0, 0], sizes = [8, 128], strides = [1, 1]} : vector<8x384xf32> to vector<8x128xf32>
    %7 = arith.negf %6 : vector<8x128xf32>
    %8 = math.exp %7 : vector<8x128xf32>
    %cst_5 = arith.constant 1.000000e+00 : f32
    %9 = vector.broadcast %cst_5 : f32 to vector<8x128xf32>
    %10 = arith.addf %9, %8 : vector<8x128xf32>
    %11 = arith.divf %9, %10 : vector<8x128xf32>
    %12 = vector.extract_strided_slice %5 {offsets = [0, 128], sizes = [8, 128], strides = [1, 1]} : vector<8x384xf32> to vector<8x128xf32>
    %13 = math.tanh %12 : vector<8x128xf32>
    %14 = vector.extract_strided_slice %5 {offsets = [0, 256], sizes = [8, 128], strides = [1, 1]} : vector<8x384xf32> to vector<8x128xf32>
    %15 = arith.negf %14 : vector<8x128xf32>
    %16 = math.exp %15 : vector<8x128xf32>
    %cst_6 = arith.constant 1.000000e+00 : f32
    %17 = vector.broadcast %cst_6 : f32 to vector<8x128xf32>
    %18 = arith.addf %17, %16 : vector<8x128xf32>
    %19 = arith.divf %17, %18 : vector<8x128xf32>
    %20 = arith.mulf %11, %13 : vector<8x128xf32>
    %21 = math.tanh %20 : vector<8x128xf32>
    %22 = arith.mulf %19, %21 : vector<8x128xf32>
    %23 = arith.truncf %22 : vector<8x128xf32> to vector<8x128xbf16>
    %c0_7 = arith.constant 0 : index
    %c0_8 = arith.constant 0 : index
    %24 = vector.load %arg4[%c0_7, %c0_8] : memref<128x384xbf16, #tpu.memory_space<vmem>>, vector<128x384xbf16>
    %cst_9 = arith.constant dense<0.000000e+00> : vector<8x384xf32>
    %25 = tpu.matmul %23, %24, %cst_9 {dimension_numbers = #tpu.dot_dimension_numbers<[1], [0], [0], [1], [0, 0, 1, 1], [], []>} : vector<8x128xbf16>, vector<128x384xbf16>, vector<8x384xf32> -> vector<8x384xf32>
    %c0_10 = arith.constant 0 : index
    %c0_11 = arith.constant 0 : index
    %26 = vector.load %arg5[%c0_10, %c0_11] : memref<1x384xf32, #tpu.memory_space<vmem>>, vector<1x384xf32>
    %27 = vector.broadcast %26 : vector<1x384xf32> to vector<8x384xf32>
    %28 = arith.addf %25, %27 : vector<8x384xf32>
    %29 = vector.extract_strided_slice %28 {offsets = [0, 0], sizes = [8, 128], strides = [1, 1]} : vector<8x384xf32> to vector<8x128xf32>
    %30 = arith.negf %29 : vector<8x128xf32>
    %31 = math.exp %30 : vector<8x128xf32>
    %cst_12 = arith.constant 1.000000e+00 : f32
    %32 = vector.broadcast %cst_12 : f32 to vector<8x128xf32>
    %33 = arith.addf %32, %31 : vector<8x128xf32>
    %34 = arith.divf %32, %33 : vector<8x128xf32>
    %35 = vector.extract_strided_slice %28 {offsets = [0, 128], sizes = [8, 128], strides = [1, 1]} : vector<8x384xf32> to vector<8x128xf32>
    %36 = math.tanh %35 : vector<8x128xf32>
    %37 = vector.extract_strided_slice %28 {offsets = [0, 256], sizes = [8, 128], strides = [1, 1]} : vector<8x384xf32> to vector<8x128xf32>
    %38 = arith.negf %37 : vector<8x128xf32>
    %39 = math.exp %38 : vector<8x128xf32>
    %cst_13 = arith.constant 1.000000e+00 : f32
    %40 = vector.broadcast %cst_13 : f32 to vector<8x128xf32>
    %41 = arith.addf %40, %39 : vector<8x128xf32>
    %42 = arith.divf %40, %41 : vector<8x128xf32>
    %43 = arith.mulf %34, %36 : vector<8x128xf32>
    %44 = math.tanh %43 : vector<8x128xf32>
    %45 = arith.mulf %42, %44 : vector<8x128xf32>
    %46 = arith.truncf %45 : vector<8x128xf32> to vector<8x128xbf16>
    %c0_14 = arith.constant 0 : index
    %c0_15 = arith.constant 0 : index
    %47 = vector.load %arg6[%c0_14, %c0_15] : memref<128x128xbf16, #tpu.memory_space<vmem>>, vector<128x128xbf16>
    %cst_16 = arith.constant dense<0.000000e+00> : vector<8x128xf32>
    %48 = tpu.matmul %46, %47, %cst_16 {dimension_numbers = #tpu.dot_dimension_numbers<[1], [0], [0], [1], [0, 0, 1, 1], [], []>} : vector<8x128xbf16>, vector<128x128xbf16>, vector<8x128xf32> -> vector<8x128xf32>
    %c0_17 = arith.constant 0 : index
    %c0_18 = arith.constant 0 : index
    %49 = vector.load %arg7[%c0_17, %c0_18] : memref<1x128xf32, #tpu.memory_space<vmem>>, vector<1x128xf32>
    %50 = vector.broadcast %49 : vector<1x128xf32> to vector<8x128xf32>
    %51 = arith.addf %48, %50 : vector<8x128xf32>
    %c0_19 = arith.constant 0 : index
    %c0_20 = arith.constant 0 : index
    %52 = vector.load %arg8[%c0_19, %c0_20] : memref<8x128xf32, #tpu.memory_space<vmem>>, vector<8x128xf32>
    tpu.vector_store %arg8[%c0_19, %c0_20], %51 {strides = array<i32>} : memref<8x128xf32, #tpu.memory_space<vmem>>, vector<8x128xf32>,
    return
  }
  func.func @transform_0(%arg0: i32) -> (i32, i32) {
    %c0_i32 = arith.constant 0 : i32
    %c0_i32_0 = arith.constant 0 : i32
    return %arg0, %c0_i32 : i32, i32
  }
  func.func @transform_1(%arg0: i32) -> (i32, i32) {
    %c0_i32 = arith.constant 0 : i32
    %c0_i32_0 = arith.constant 0 : i32
    %c0_i32_1 = arith.constant 0 : i32
    return %c0_i32, %c0_i32_0 : i32, i32
  }
  func.func @transform_2(%arg0: i32) -> (i32, i32) {
    %c0_i32 = arith.constant 0 : i32
    %c0_i32_0 = arith.constant 0 : i32
    %c0_i32_1 = arith.constant 0 : i32
    return %c0_i32, %c0_i32_0 : i32, i32
  }
  func.func @transform_3(%arg0: i32) -> (i32, i32) {
    %c0_i32 = arith.constant 0 : i32
    %c0_i32_0 = arith.constant 0 : i32
    %c0_i32_1 = arith.constant 0 : i32
    return %c0_i32, %c0_i32_0 : i32, i32
  }
  func.func @transform_4(%arg0: i32) -> (i32, i32) {
    %c0_i32 = arith.constant 0 : i32
    %c0_i32_0 = arith.constant 0 : i32
    %c0_i32_1 = arith.constant 0 : i32
    return %c0_i32, %c0_i32_0 : i32, i32
  }
  func.func @transform_5(%arg0: i32) -> (i32, i32) {
    %c0_i32 = arith.constant 0 : i32
    %c0_i32_0 = arith.constant 0 : i32
    %c0_i32_1 = arith.constant 0 : i32
    return %c0_i32, %c0_i32_0 : i32, i32
  }
  func.func @transform_6(%arg0: i32) -> (i32, i32) {
    %c0_i32 = arith.constant 0 : i32
    %c0_i32_0 = arith.constant 0 : i32
    %c0_i32_1 = arith.constant 0 : i32
    return %c0_i32, %c0_i32_0 : i32, i32
  }
  func.func @transform_7(%arg0: i32) -> (i32, i32) {
    %c0_i32 = arith.constant 0 : i32
    %c0_i32_0 = arith.constant 0 : i32
    return %arg0, %c0_i32 : i32, i32
  }
}

</mosaic_0001>

<bundles_post_ra>
// kernel: tpu_custom_call.1
= control target key start
LH: loop header
LB: loop body
LE: loop exit
PB: predicated region body
PF: predicated region fallthrough
CT: control target
= control target key end

     0   :  { %12 = vsyncpa [#allocation3], 0  ;;  %s1016_s0 = inlined_call_operand.hbm [shape: bf16[8,16], index: 0, kind: input, shape index: {}]   ;;  %s1017_s1 = inlined_call_operand.hbm [shape: bf16[16,384], index: 1, kind: input, shape index: {}]   ;;  %s1018_s2 = inlined_call_operand.hbm [shape: f32[1,384], index: 2, kind: input, shape index: {}]   ;;  %s1019_s3 = inlined_call_operand.hbm [shape: bf16[128,384], index: 3, kind: input, shape index: {}]   ;;  %s1020_s4 = inlined_call_operand.vmem [shape: f32[1,384], index: 4, kind: input, shape index: {}]   ;;  %s1021_s5 = inlined_call_operand.hbm [shape: bf16[128,128], index: 5, kind: input, shape index: {}]   ;;  %s1022_s6 = inlined_call_operand.vmem [shape: f32[1,128], index: 6, kind: input, shape index: {}]   ;;  %s1023_s7 = inlined_call_operand.hbm [shape: f32[8,128], index: 7, kind: output, shape index: {}]  }
   0x1   :  { %13 = vsyncpa [#allocation6], 0 }
   0x2   :  { %14 = vsyncpa [#allocation9], 0  ;;  %s31_s26 = sshll.u32 %s1017_s1, 4  ;;  %s32_s26 = int_to_ptr.hbm [resolvable:$true] %s31_s26 }
   0x3   :  { %15 = vsyncpa [#allocation4], 0  ;;  %s937_s27 = smov [#allocation5]   ;;  %s55_s8 = sshll.u32 %s1019_s3, 4  ;;  %s56_s8 = int_to_ptr.hbm [resolvable:$true] %s55_s8 }
   0x4   :  { %s33_s28 = sshll.u32 %s937_s27, 4  ;;  %s938_s9 = smov 192   ;;  %s34_s28 = int_to_ptr.vmem [resolvable:$true] %s33_s28 }
   0x5   :  { %s939_s10 = smov 12   ;;  %s940_s11 = smov [#allocation8]  }
   0x6   :  { %39 = dma.hbm_to_vmem [thread:$0]  %s32_s26, 384, %s34_s28, [#allocation6], %s938_s9, %s938_s9, %s939_s10  }
   0x7   :  { %s57_s12 = sshll.u32 %s940_s11, 4  ;;  %s21_s15 = sshll.u32 %s1016_s0, 4  ;;  %s58_s12 = int_to_ptr.vmem [resolvable:$true] %s57_s12  ;;  %s22_s15 = int_to_ptr.hbm [resolvable:$true] %s21_s15 }
   0x8   :  { %63 = dma.hbm_to_vmem [thread:$0]  %s56_s8, 3072, %s58_s12, [#allocation9], %s938_s9, %s938_s9, %s939_s10  }
   0x9   :  { %s45_s17 = sshll.u32 %s1018_s2, 4  ;;  %s941_s18 = smov [#allocation2]   ;;  %s46_s17 = int_to_ptr.hbm [resolvable:$true] %s45_s17 }
   0xa   :  { %s23_s19 = sshll.u32 %s941_s18, 4  ;;  %s942_s3 = smov [#allocation7]   ;;  %s24_s19 = int_to_ptr.vmem [resolvable:$true] %s23_s19 }
   0xb   :  { %26 = dma.hbm_to_vmem [thread:$0]  %s22_s15, 64, %s24_s19, [#allocation3]  }
   0xc   :  { %s47_s20 = sshll.u32 %s942_s3, 4  ;;  %s70_s23 = sshll.u32 %s1021_s5, 4  ;;  %s48_s20 = int_to_ptr.vmem [resolvable:$true] %s47_s20  ;;  %s71_s23 = int_to_ptr.hbm [resolvable:$true] %s70_s23 }
   0xd   :  { %50 = dma.hbm_to_vmem [thread:$0]  %s46_s17, 48, %s48_s20, [#allocation6]  }
   0xe   :  { %s943_s0 = smov [#allocation10]   ;;  %s944_s25 = smov 64  }
   0xf   :  { %s72_s24 = sshll.u32 %s943_s0, 4  ;;  %s945_s26 = smov 4   ;;  %s73_s24 = int_to_ptr.vmem [resolvable:$true] %s72_s24 }
  0x10   :  { %78 = dma.hbm_to_vmem [thread:$0]  %s71_s23, 1024, %s73_s24, [#allocation9], %s944_s25, %s944_s25, %s945_s26  }
  0x11   :  { %929 = dma.done.wait [#allocation3], 64  }
  0x12   :  { %930 = vsyncadd [#allocation3], 4294967232 }
  0x13   :  { %931 = dma.done.wait [#allocation6], 432  }
  0x14   :  { %932 = vsyncadd [#allocation6], 4294966864 }
  0x15   :  { %933 = dma.done.wait [#allocation9], 4096  }
  0x16   :  { %934 = vsyncadd [#allocation9], 4294963200  ;;  %v570_v0 = vld [vmem:[#allocation5] sm:$0xf]  ;;  %v716_v1 = vld [vmem:[#allocation5 + $0x8] sm:$0xf0] }
  0x17   :  { %v578_v2 = vld [vmem:[#allocation5 + $0x8] sm:$0xf]  ;;  %v571_v3 = vor.u32 %v716_v1, %v570_v0  ;;  %v717_v4 = vld [vmem:[#allocation5 + $0x10] sm:$0xf0]  ;;  %v715_v5 = vld [vmem:[#allocation5 + $0x4] sm:$0xf] }
  0x18   :  { %v579_v6 = vor.u32 %v717_v4, %v578_v2  ;;  %v572_v7 = vld [vmem:[#allocation5 + $0xc] sm:$0xf0]  ;;  %v102_v8 = vld [vmem:[#allocation2] sm:$0xf]  ;;  %vm131_vm0 = vcmask 130048   ;;  %s946_s28 = smov [#allocation11]  }
  0x19   :  { %142 = vmatpush.bf16.msra.mxu0 %v571_v3  ;;  %v575_v9 = vor.u32 %v715_v5, %v572_v7  ;;  %v671_v10 = vld [vmem:[#allocation8 + $0xa8] sm:$0xf]  ;;  %v740_v11 = vld [vmem:[#allocation8 + $0xb0] sm:$0xf0]  ;;  %v739_v12 = vld [vmem:[#allocation8 + $0xac] sm:$0xf] }
  0x1a   :  { %168 = vmatpush.bf16.msra.mxu2 %v579_v6  ;;  %v672_v13 = vor.u32 %v740_v11, %v671_v10  ;;  %v673_v14 = vld [vmem:[#allocation8 + $0xb4] sm:$0xf0]  ;;  %v679_v15 = vld [vmem:[#allocation8 + $0xb0] sm:$0xf]  ;;  %v741_v16 = vld [vmem:[#allocation8 + $0xb8] sm:$0xf0] }
  0x1b   :  { %155 = vmatpush.bf16.msra.mxu1 %v575_v9  ;;  %v676_v17 = vor.u32 %v739_v12, %v673_v14  ;;  %v680_v18 = vor.u32 %v741_v16, %v679_v15  ;;  %v659_v19 = vld [vmem:[#allocation8 + $0x90] sm:$0xf]  ;;  %v737_v20 = vld [vmem:[#allocation8 + $0x98] sm:$0xf0]  ;;  %v736_v21 = vld [vmem:[#allocation8 + $0x94] sm:$0xf] }
  0x1c   :  { %580 = vmatmul.msk.bf16.vlgmr.msra.gmra.mxu0 %vm131_vm0, %v102_v8  ;;  %385 = vmatpush.bf16.msra.mxu3 %v672_v13  ;;  %v660_v22 = vor.u32 %v737_v20, %v659_v19  ;;  %v661_v23 = vld [vmem:[#allocation8 + $0x9c] sm:$0xf0]  ;;  %v667_v24 = vld [vmem:[#allocation8 + $0x98] sm:$0xf]  ;;  %v738_v25 = vld [vmem:[#allocation8 + $0xa0] sm:$0xf0] }
  0x1d   :  { %582 = vmatmul.msk.bf16.vlgmr.msra.gmra.mxu2 %vm131_vm0, %v102_v8  ;;  %398 = vmatpush.bf16.msrb.mxu0 %v676_v17  ;;  %v664_v26 = vor.u32 %v736_v21, %v661_v23  ;;  %v668_v27 = vor.u32 %v738_v25, %v667_v24  ;;  %v647_v28 = vld [vmem:[#allocation8 + $0x78] sm:$0xf]  ;;  %v734_v29 = vld [vmem:[#allocation8 + $0x80] sm:$0xf0]  ;;  %v733_v30 = vld [vmem:[#allocation8 + $0x7c] sm:$0xf] }
  0x1e   :  { %581 = vmatmul.msk.bf16.vlgmr.msra.gmra.mxu1 %vm131_vm0, %v102_v8  ;;  %v648_v31 = vor.u32 %v734_v29, %v647_v28  ;;  %v649_v32 = vld [vmem:[#allocation8 + $0x84] sm:$0xf0]  ;;  %v655_v33 = vld [vmem:[#allocation8 + $0x80] sm:$0xf]  ;;  %v735_v34 = vld [vmem:[#allocation8 + $0x88] sm:$0xf0] }
  0x1f   :  { %411 = vmatpush.bf16.msrb.mxu1 %v680_v18  ;;  %v652_v35 = vor.u32 %v733_v30, %v649_v32  ;;  %v656_v36 = vor.u32 %v735_v34, %v655_v33  ;;  %v635_v37 = vld [vmem:[#allocation8 + $0x60] sm:$0xf]  ;;  %v731_v38 = vld [vmem:[#allocation8 + $0x68] sm:$0xf0]  ;;  %v730_v39 = vld [vmem:[#allocation8 + $0x64] sm:$0xf] }
  0x20   :  { %386 = vmatpush.bf16.msra.mxu3 %v660_v22  ;;  %v636_v40 = vor.u32 %v731_v38, %v635_v37  ;;  %v637_v41 = vld [vmem:[#allocation8 + $0x6c] sm:$0xf0]  ;;  %v643_v42 = vld [vmem:[#allocation8 + $0x68] sm:$0xf]  ;;  %v732_v43 = vld [vmem:[#allocation8 + $0x70] sm:$0xf0] }
  0x21   :  { %399 = vmatpush.bf16.msrb.mxu0 %v664_v26  ;;  %v640_v44 = vor.u32 %v730_v39, %v637_v41  ;;  %v644_v45 = vor.u32 %v732_v43, %v643_v42  ;;  %v1002_v46 = vld [vmem:[#allocation7] sm:$0x7]  ;;  %v623_v47 = vld [vmem:[#allocation8 + $0x48] sm:$0xf]  ;;  %v728_v48 = vld [vmem:[#allocation8 + $0x50] sm:$0xf0] }
  0x22   :  { %v727_v49 = vld [vmem:[#allocation8 + $0x4c] sm:$0xf]  ;;  %v624_v50 = vor.u32 %v728_v48, %v623_v47  ;;  %v625_v51 = vld [vmem:[#allocation8 + $0x54] sm:$0xf0]  ;;  %v631_v52 = vld [vmem:[#allocation8 + $0x50] sm:$0xf] }
  0x23   :  { %412 = vmatpush.bf16.msrb.mxu1 %v668_v27  ;;  %v729_v53 = vld [vmem:[#allocation8 + $0x58] sm:$0xf0]  ;;  %v109_v54 = vperm.slane %v1002_v46, 0  ;;  %v628_v55 = vor.u32 %v727_v49, %v625_v51  ;;  %v111_v57 = vperm.slane %v1002_v46, 2  ;;  %v611_v58 = vld [vmem:[#allocation8 + $0x30] sm:$0xf] }
  0x24   :  { %387 = vmatpush.bf16.msra.mxu3 %v648_v31  ;;  %v632_v56 = vor.u32 %v729_v53, %v631_v52  ;;  %v725_v59 = vld [vmem:[#allocation8 + $0x38] sm:$0xf0]  ;;  %v724_v60 = vld [vmem:[#allocation8 + $0x34] sm:$0xf]  ;;  %v613_v63 = vld [vmem:[#allocation8 + $0x3c] sm:$0xf0] }
  0x25   :  { %400 = vmatpush.bf16.msrb.mxu0 %v652_v35  ;;  %v612_v62 = vor.u32 %v725_v59, %v611_v58  ;;  %v619_v0 = vld [vmem:[#allocation8 + $0x38] sm:$0xf]  ;;  %v726_v1 = vld [vmem:[#allocation8 + $0x40] sm:$0xf0]  ;;  %v616_v3 = vor.u32 %v724_v60, %v613_v63  ;;  %v721_v7 = vld [vmem:[#allocation8 + $0x1c] sm:$0xf] }
  0x26   :  { %v620_v4 = vor.u32 %v726_v1, %v619_v0  ;;  %v599_v5 = vld [vmem:[#allocation8 + $0x18] sm:$0xf]  ;;  %v722_v6 = vld [vmem:[#allocation8 + $0x20] sm:$0xf0]  ;;  %v601_v10 = vld [vmem:[#allocation8 + $0x24] sm:$0xf0] }
  0x27   :  { %413 = vmatpush.bf16.msrb.mxu1 %v656_v36  ;;  %v600_v9 = vor.u32 %v722_v6, %v599_v5  ;;  %v607_v11 = vld [vmem:[#allocation8 + $0x20] sm:$0xf]  ;;  %v723_v12 = vld [vmem:[#allocation8 + $0x28] sm:$0xf0]  ;;  %v604_v14 = vor.u32 %v721_v7, %v601_v10  ;;  %v718_v18 = vld [vmem:[#allocation8 + $0x4] sm:$0xf] }
  0x28   :  { %388 = vmatpush.bf16.msra.mxu3 %v636_v40  ;;  %v608_v15 = vor.u32 %v723_v12, %v607_v11  ;;  %v587_v16 = vld [vmem:[#allocation8] sm:$0xf]  ;;  %v719_v17 = vld [vmem:[#allocation8 + $0x8] sm:$0xf0]  ;;  %v589_v19 = vld [vmem:[#allocation8 + $0xc] sm:$0xf0] }
  0x29   :  { %401 = vmatpush.bf16.msrb.mxu0 %v640_v44  ;;  %v595_v20 = vld [vmem:[#allocation8 + $0x8] sm:$0xf]  ;;  %v720_v21 = vld [vmem:[#allocation8 + $0x10] sm:$0xf0]  ;;  %v588_v22 = vor.u32 %v719_v17, %v587_v16  ;;  %v592_v24 = vor.u32 %v718_v18, %v589_v19  ;;  %v110_v32 = vperm.slane %v1002_v46, 1  ;;  %v745_v5 = vld [vmem:[#allocation10 + $0x18] sm:$0xff] }
  0x2a   :  { %v596_v25 = vor.u32 %v720_v21, %v595_v20  ;;  %v748_v63 = vld [vmem:[#allocation10 + $0x30] sm:$0xff]  ;;  %v747_v0 = vld [vmem:[#allocation10 + $0x28] sm:$0xff]  ;;  %v249_v1 = vld [vmem:[%s1020_s4] sm:$0x7]  ;;  %s554_s29 = sshll.u32 %s946_s28, 4  ;;  %s556_s9 = sshll.u32 %s1023_s7, 4  ;;  %s555_s29 = int_to_ptr.vmem [resolvable:$true] %s554_s29  ;;  %s557_s9 = int_to_ptr.hbm [resolvable:$true] %s556_s9 }
  0x2b   :  { %414 = vmatpush.bf16.msrb.mxu1 %v644_v45  ;;  %v744_v10 = vld [vmem:[#allocation10 + $0x10] sm:$0xff]  ;;  %v742_v18 = vld [vmem:[#allocation10] sm:$0xff] }
  0x2c   :  { %389 = vmatpush.bf16.msra.mxu3 %v624_v50 }
  0x2d   :  { %402 = vmatpush.bf16.msrb.mxu0 %v628_v55 }
  0x2f   :  { %415 = vmatpush.bf16.msrb.mxu1 %v632_v56 }
  0x30   :  { %390 = vmatpush.bf16.msra.mxu3 %v612_v62  ;;  %v749_v62 = vld [vmem:[#allocation10 + $0x38] sm:$0xff] }
  0x31   :  { %403 = vmatpush.bf16.msrb.mxu0 %v616_v3  ;;  %535 = vmatpush.bf16.msrb.mxu2 %v749_v62  ;;  %v746_v3 = vld [vmem:[#allocation10 + $0x20] sm:$0xff] }
  0x33   :  { %416 = vmatpush.bf16.msrb.mxu1 %v620_v4 }
  0x34   :  { %391 = vmatpush.bf16.msra.mxu3 %v600_v9 }
  0x35   :  { %404 = vmatpush.bf16.msrb.mxu0 %v604_v14  ;;  %536 = vmatpush.bf16.msrb.mxu2 %v748_v63  ;;  %v743_v14 = vld [vmem:[#allocation10 + $0x8] sm:$0xff] }
  0x37   :  { %417 = vmatpush.bf16.msrb.mxu1 %v608_v15 }
  0x38   :  { %392 = vmatpush.bf16.msra.mxu3 %v588_v22 }
  0x39   :  { %405 = vmatpush.bf16.msrb.mxu0 %v592_v24  ;;  %537 = vmatpush.bf16.msrb.mxu2 %v747_v0 }
  0x3b   :  { %418 = vmatpush.bf16.msrb.mxu1 %v596_v25 }
  0x3d   :  { %538 = vmatpush.bf16.msrb.mxu2 %v746_v3 }
  0x41   :  { %539 = vmatpush.bf16.msrb.mxu2 %v745_v5 }
  0x45   :  { %540 = vmatpush.bf16.msrb.mxu2 %v744_v10 }
  0x49   :  { %541 = vmatpush.bf16.msrb.mxu2 %v743_v14 }
  0x4d   :  { %542 = vmatpush.bf16.msrb.mxu2 %v742_v18 }
  0x99   :  { %v144_v61 = vpop.f32.mrf.mxu0 }
  0x9a   :  { %v145_v2 = vadd.f32 %v144_v61, %v109_v54 }
  0x9b   :  { %v157_v8 = vpop.f32.mrf.mxu1 }
  0x9c   :  { %v583_v13 = vmul.f32 -1.442695, %v145_v2  ;;  %v158_v35 = vadd.f32 %v157_v8, %v110_v32  ;;  %v253_v2 = vperm.slane %v249_v1, 2  ;;  %v251_v8 = vperm.slane %v249_v1, 0 }
  0x9e   :  { %761 = vpow2.f32 %v583_v13 }
  0xa0   :  { %v170_v23 = vpop.f32.mrf.mxu2 }
  0xa1   :  { %v171_v26 = vadd.f32 %v170_v23, %v111_v57  ;;  %v146_v27 = vpop.f32.mrf.mxu0  ;;  %v252_v23 = vperm.slane %v249_v1, 1 }
  0xa3   :  { %v584_v28 = vmul.f32 -1.442695, %v171_v26  ;;  %v159_v29 = vpop.f32.mrf.mxu1 }
  0xa4   :  { %v762_v30 = vpop.eup %761 }
  0xa5   :  { %v177_v31 = vadd.f32 1.0, %v762_v30  ;;  %763 = vpow2.f32 %v584_v28 }
  0xa7   :  { %765 = vrcp.f32 %v177_v31  ;;  %v189_v40 = vand.u32 2147483648, %v177_v31  ;;  %v187_v42 = vand.u32 2147483647, %v177_v31  ;;  %vm183_vm2 = vweird.f32 %v177_v31 }
  0xa8   :  { %v172_v33 = vpop.f32.mrf.mxu2 }
  0xa9   :  { %v190_v46 = vor.u32 1.1754944e-38, %v189_v40  ;;  %vm188_vm4 = vcmp.eq.f32.partialorder %v187_v42, 8.507059e+37 }
  0xab   :  { %v764_v34 = vpop.eup %763 }
  0xac   :  { %v197_v36 = vadd.f32 1.0, %v764_v34 }
  0xad   :  { %v766_v37 = vpop.eup %765 }
  0xae   :  { %v179_v38 = vmul.f32 %v766_v37, %v177_v31  ;;  %767 = vrcp.f32 %v197_v36  ;;  %vm184_vm1 = vweird.f32 %v766_v37  ;;  %v209_v53 = vand.u32 2147483648, %v197_v36 }
  0xaf   :  { %769 = vtanh.f32 %v158_v35  ;;  %vm185_vm3 = vmor %vm183_vm2, %vm184_vm1  ;;  %vm203_vm6 = vweird.f32 %v197_v36  ;;  %v207_v55 = vand.u32 2147483647, %v197_v36 }
  0xb0   :  { %v180_v39 = vsub.f32 1.0, %v179_v38  ;;  %v210_v57 = vor.u32 1.1754944e-38, %v209_v53 }
  0xb1   :  { %vm208_vm8 = vcmp.eq.f32.partialorder %v207_v55, 8.507059e+37 }
  0xb2   :  { %v181_v41 = vmul.f32 %v766_v37, %v180_v39 }
  0xb4   :  { %v768_v43 = vpop.eup %767  ;;  %v182_v44 = vadd.f32 %v766_v37, %v181_v41 }
  0xb5   :  { %v770_v45 = vpop.eup %769  ;;  %v199_v47 = vmul.f32 %v768_v43, %v197_v36  ;;  %vm204_vm5 = vweird.f32 %v768_v43 }
  0xb6   :  { %v186_v48 = vsel %vm185_vm3, %v766_v37, %v182_v44  ;;  %vm205_vm7 = vmor %vm203_vm6, %vm204_vm5 }
  0xb7   :  { %v191_v49 = vsel %vm188_vm4, %v190_v46, %v186_v48  ;;  %v200_v50 = vsub.f32 1.0, %v199_v47 }
  0xb8   :  { %v213_v51 = vmul.f32 %v770_v45, %v191_v49 }
  0xb9   :  { %v201_v52 = vmul.f32 %v768_v43, %v200_v50  ;;  %v760_v50 = vld [vmem:[%s1022_s6] ss:$0 sm:$0xff] }
  0xba   :  { %771 = vtanh.f32 %v213_v51 }
  0xbb   :  { %v202_v54 = vadd.f32 %v768_v43, %v201_v52 }
  0xbd   :  { %v206_v56 = vsel %vm205_vm7, %v768_v43, %v202_v54 }
  0xbe   :  { %v211_v59 = vsel %vm208_vm8, %v210_v57, %v206_v56 }
  0xc0   :  { %v772_v58 = vpop.eup %771 }
  0xc1   :  { %v215_v60 = vmul.f32 %v772_v58, %v211_v59 }
  0xc3   :  { %v216_v61 = vpack.c.bf16 %v215_v60, %v215_v60 }
  0xc5   :  { %393 = vmatmul.bf16.vlgmr.msra.gmra.mxu3 %v216_v61  ;;  %406 = vmatmul.bf16.vlgmr.msrb.gmra.mxu0 %v216_v61 }
  0xc6   :  { %419 = vmatmul.bf16.vlgmr.msrb.gmra.mxu1 %v216_v61 }
 0x142   :  { %v407_v4 = vpop.f32.mrf.mxu0 }
 0x143   :  { %v420_v6 = vpop.f32.mrf.mxu1  ;;  %v408_v26 = vadd.f32 %v407_v4, %v252_v23 }
 0x144   :  { %v421_v7 = vadd.f32 %v420_v6, %v253_v2 }
 0x146   :  { %v682_v9 = vmul.f32 -1.442695, %v421_v7 }
 0x148   :  { %773 = vpow2.f32 %v682_v9  ;;  %v394_v11 = vpop.f32.mrf.mxu3 }
 0x149   :  { %v395_v12 = vadd.f32 %v394_v11, %v251_v8 }
 0x14a   :  { %v409_v13 = vpop.f32.mrf.mxu0 }
 0x14b   :  { %v681_v15 = vmul.f32 -1.442695, %v395_v12  ;;  %v422_v16 = vpop.f32.mrf.mxu1 }
 0x14d   :  { %775 = vpow2.f32 %v681_v15 }
 0x14e   :  { %v774_v17 = vpop.eup %773 }
 0x14f   :  { %v447_v19 = vadd.f32 1.0, %v774_v17 }
 0x150   :  { %v396_v20 = vpop.f32.mrf.mxu3 }
 0x151   :  { %777 = vrcp.f32 %v447_v19  ;;  %v459_v42 = vand.u32 2147483648, %v447_v19  ;;  %vm453_vm14 = vweird.f32 %v447_v19  ;;  %v457_v43 = vand.u32 2147483647, %v447_v19 }
 0x153   :  { %v776_v21 = vpop.eup %775  ;;  %v460_v45 = vor.u32 1.1754944e-38, %v459_v42  ;;  %vm458_vm0 = vcmp.eq.f32.partialorder %v457_v43, 8.507059e+37 }
 0x154   :  { %v427_v22 = vadd.f32 1.0, %v776_v21 }
 0x156   :  { %779 = vrcp.f32 %v427_v22  ;;  %v439_v30 = vand.u32 2147483648, %v427_v22  ;;  %v437_v33 = vand.u32 2147483647, %v427_v22  ;;  %vm433_vm10 = vweird.f32 %v427_v22 }
 0x157   :  { %v778_v24 = vpop.eup %777  ;;  %781 = vtanh.f32 %v408_v26 }
 0x158   :  { %v449_v27 = vmul.f32 %v778_v24, %v447_v19  ;;  %v440_v35 = vor.u32 1.1754944e-38, %v439_v30  ;;  %vm438_vm12 = vcmp.eq.f32.partialorder %v437_v33, 8.507059e+37  ;;  %vm454_vm13 = vweird.f32 %v778_v24 }
 0x159   :  { %vm455_vm15 = vmor %vm453_vm14, %vm454_vm13 }
 0x15a   :  { %v450_v31 = vsub.f32 1.0, %v449_v27 }
 0x15c   :  { %v780_v25 = vpop.eup %779  ;;  %v451_v36 = vmul.f32 %v778_v24, %v450_v31 }
 0x15d   :  { %v429_v28 = vmul.f32 %v780_v25, %v427_v22  ;;  %vm434_vm9 = vweird.f32 %v780_v25  ;;  %v782_v38 = vpop.eup %781 }
 0x15e   :  { %vm435_vm11 = vmor %vm433_vm10, %vm434_vm9  ;;  %v452_v41 = vadd.f32 %v778_v24, %v451_v36 }
 0x15f   :  { %v430_v29 = vsub.f32 1.0, %v429_v28 }
 0x160   :  { %v456_v44 = vsel %vm455_vm15, %v778_v24, %v452_v41 }
 0x161   :  { %v431_v32 = vmul.f32 %v780_v25, %v430_v29  ;;  %v461_v46 = vsel %vm458_vm0, %v460_v45, %v456_v44 }
 0x163   :  { %v432_v34 = vadd.f32 %v780_v25, %v431_v32 }
 0x165   :  { %v436_v37 = vsel %vm435_vm11, %v780_v25, %v432_v34 }
 0x166   :  { %v441_v39 = vsel %vm438_vm12, %v440_v35, %v436_v37 }
 0x167   :  { %v463_v40 = vmul.f32 %v782_v38, %v441_v39 }
 0x169   :  { %783 = vtanh.f32 %v463_v40 }
 0x16f   :  { %v784_v47 = vpop.eup %783 }
 0x170   :  { %v465_v48 = vmul.f32 %v784_v47, %v461_v46 }
 0x172   :  { %v466_v49 = vpack.c.bf16 %v465_v48, %v465_v48 }
 0x174   :  { %543 = vmatmul.bf16.vlgmr.msrb.gmra.mxu2 %v466_v49 }
 0x1f7   :  { %v544_v51 = vpop.f32.mrf.mxu2 }
 0x1f8   :  { %v545_v52 = vadd.f32 %v760_v50, %v544_v51 }
 0x1fa   :  { %548 = vst [vmem:[#allocation11] sm:$0xff] %v545_v52 }
 0x1fb   :  { %559 = dma.vmem_to_hbm [thread:$0]  %s555_s29, 128, %s557_s9, [#allocation4]  }
 0x1ff   :  { %v546_v53 = vpop.f32.mrf.mxu2 }
 0x200   :  { %935 = dma.done.wait [#allocation4], 128  }
 0x201   :  { %936 = vsyncadd [#allocation4], 4294967168 }
 0x202   :  { %564 = vsyncpa [#allocation3], 1 }
 0x203   :  { %565 = vsyncpa [#allocation6], 1 }
 0x204   :  { %566 = vsyncpa [#allocation9], 1 }
 0x205   :  { %567 = vsyncpa [#allocation4], 1 }

</bundles_post_ra>
